<compile_context>
chip_gen: v6e
topology: v6e:2x2x1
jax: 0.10.0
libtpu: 0.0.40
codegen_flags: <defaults>
</compile_context>

<pallas_src>
import jax
import jax.numpy as jnp
from jax.experimental import pallas as pl
from jax.experimental.pallas import tpu as pltpu

LANE = 128
SUBLANE = 8
MAX_TILE_ROWS = 2048  # 2048 * 128 * 4B = 1 MiB per input stream per grid step


# ----------------------------------------------------------------------------
# Scheduler (LinearScheduler equivalent) — plain-JAX parameter setup (glue).
# ----------------------------------------------------------------------------
def make_linear_scheduler(timesteps=1000, beta_start=1e-4, beta_end=0.02):
    betas = jnp.linspace(beta_start, beta_end, timesteps, dtype=jnp.float32)
    alphas = 1.0 - betas
    alphas_cumprod = jnp.cumprod(alphas)
    return {
        "timesteps": timesteps,
        "alpha_cumprod_sqrt": jnp.sqrt(alphas_cumprod),
        "one_minus_alphas_cumprod_sqrt": jnp.sqrt(1.0 - alphas_cumprod),
    }


# ----------------------------------------------------------------------------
# Layout helpers: (B, C, H, W) -> lane-dense (B, rows, 128); free contiguous reshape.
# ----------------------------------------------------------------------------
def _lane_dense(x):
    b = x.shape[0]
    n = 1
    for d in x.shape[1:]:
        n *= d
    # TODO(synk): pad flattened per-sample size when not a multiple of 8*128.
    assert n % (SUBLANE * LANE) == 0, "per-sample element count must be a multiple of 1024"
    return x.reshape(b, n // LANE, LANE)


def _row_tile(rows):
    if rows <= MAX_TILE_ROWS:
        return rows
    assert rows % MAX_TILE_ROWS == 0  # TODO(synk): handle ragged row counts via padding.
    return MAX_TILE_ROWS


# ----------------------------------------------------------------------------
# Kernel 1: standalone normalize (img*2 - 1)  [_normalize_fn, API parity only;
# the training path fuses this into the forward-diffusion kernel below]
# ----------------------------------------------------------------------------
def _normalize_kernel(img_ref, out_ref):
    out_ref[...] = img_ref[...] * 2.0 - 1.0


def normalize(img):
    x = _lane_dense(img)
    B, R, _ = x.shape
    tr = _row_tile(R)
    out = pl.pallas_call(
        _normalize_kernel,
        out_shape=jax.ShapeDtypeStruct(x.shape, x.dtype),
        grid=(B, R // tr),
        in_specs=[pl.BlockSpec((1, tr, LANE), lambda b, r: (b, r, 0))],
        out_specs=pl.BlockSpec((1, tr, LANE), lambda b, r: (b, r, 0)),
        compiler_params=pltpu.CompilerParams(
            dimension_semantics=("parallel", "parallel")),
    )(x)
    return out.reshape(img.shape)


# ----------------------------------------------------------------------------
# Kernel 2: fused (optional normalize) + forward diffusion
#   x_t = scale[b]*img + om[b]*noise + shift[b]
#   with scale = 2*sqrt(ac), shift = -sqrt(ac) when normalization is fused,
#        scale = sqrt(ac),   shift = 0         when img is already in [-1,1].
# Per-batch scalars live in SMEM; image/noise tiles stream through VMEM once.
# ----------------------------------------------------------------------------
def _scaled_add_kernel(scale_ref, shift_ref, om_ref, img_ref, noise_ref, out_ref):
    b = pl.program_id(0)
    out_ref[...] = (scale_ref[b] * img_ref[...]
                    + om_ref[b] * noise_ref[...]
                    + shift_ref[b])


def fused_forward_diffusion(img, noise, a_sqrt, om_sqrt, *, normalize_input):
    x = _lane_dense(img)
    n = _lane_dense(noise)
    B, R, _ = x.shape
    tr = _row_tile(R)
    if normalize_input:
        scale = (2.0 * a_sqrt).astype(jnp.float32)
        shift = (-a_sqrt).astype(jnp.float32)
    else:
        scale = a_sqrt.astype(jnp.float32)
        shift = jnp.zeros_like(scale)
    om = om_sqrt.astype(jnp.float32)

    out = pl.pallas_call(
        _scaled_add_kernel,
        out_shape=jax.ShapeDtypeStruct(x.shape, x.dtype),
        grid=(B, R // tr),
        in_specs=[
            pl.BlockSpec(memory_space=pltpu.MemorySpace.SMEM),  # scale (B,)
            pl.BlockSpec(memory_space=pltpu.MemorySpace.SMEM),  # shift (B,)
            pl.BlockSpec(memory_space=pltpu.MemorySpace.SMEM),  # om    (B,)
            pl.BlockSpec((1, tr, LANE), lambda b, r: (b, r, 0)),
            pl.BlockSpec((1, tr, LANE), lambda b, r: (b, r, 0)),
        ],
        out_specs=pl.BlockSpec((1, tr, LANE), lambda b, r: (b, r, 0)),
        compiler_params=pltpu.CompilerParams(
            dimension_semantics=("parallel", "parallel")),
    )(scale, shift, om, x, n)
    return out.reshape(img.shape)


# ----------------------------------------------------------------------------
# Kernel 3: loss partial sums
#   mse(y, noise) per sample over (C,H,W), then mean over B.  With equal counts
#   this equals the global mean, so the kernel emits per-sample lane partial
#   sums (accumulated in an (8,128) VMEM scratch, VPU adds only) and JAX does
#   the final 128-wide reduce + single divide.
# ----------------------------------------------------------------------------
def _loss_kernel(y_ref, n_ref, out_ref, acc_ref):
    c = pl.program_id(1)
    nc = pl.num_programs(1)

    @pl.when(c == 0)
    def _():
        acc_ref[...] = jnp.zeros_like(acc_ref)

    d = y_ref[...].astype(jnp.float32) - n_ref[...].astype(jnp.float32)
    d2 = (d * d).reshape(-1, SUBLANE, LANE)        # (tr//8, 8, 128)
    acc_ref[...] += jnp.sum(d2, axis=0)            # elementwise adds, no XLU per step

    @pl.when(c == nc - 1)
    def _():
        # one sublane reduction per sample; lane reduction finished in JAX
        out_ref[...] = jnp.sum(acc_ref[...], axis=0, keepdims=True)[None]


def diffusion_loss(y, noise):
    per_sample_elems = 1
    for d in y.shape[1:]:
        per_sample_elems *= d
    yl = _lane_dense(y)
    nl = _lane_dense(noise)
    B, R, _ = yl.shape
    tr = _row_tile(R)

    partial = pl.pallas_call(
        _loss_kernel,
        out_shape=jax.ShapeDtypeStruct((B, 1, LANE), jnp.float32),
        grid=(B, R // tr),
        in_specs=[
            pl.BlockSpec((1, tr, LANE), lambda b, c: (b, c, 0)),
            pl.BlockSpec((1, tr, LANE), lambda b, c: (b, c, 0)),
        ],
        out_specs=pl.BlockSpec((1, 1, LANE), lambda b, c: (b, 0, 0)),
        scratch_shapes=[pltpu.VMEM((SUBLANE, LANE), jnp.float32)],
        compiler_params=pltpu.CompilerParams(
            dimension_semantics=("parallel", "arbitrary")),
    )(yl, nl)
    return jnp.sum(partial) / (B * per_sample_elems)


# ----------------------------------------------------------------------------
# ABCDiffusion equivalent (concrete diffusion math; model / sample / forward
# are abstract in the reference module).
# ----------------------------------------------------------------------------
class ABCDiffusionPallas:
    def __init__(self, scheduler, image_size=16, auto_normalize=True):
        self.scheduler = scheduler
        self.image_size = image_size
        self.auto_normalize = auto_normalize

    def generate_noise(self, key, shape):
        return jax.random.normal(key, shape, dtype=jnp.float32)

    def sample_timesteps(self, key, batch):
        return jax.random.randint(key, (batch,), 0, self.scheduler["timesteps"])

    def normalize(self, img):
        return normalize(img) if self.auto_normalize else img

    def denormalize(self, img):
        return (img + 1.0) * 0.5 if self.auto_normalize else img

    def forward_diffusion(self, img, noise, t, *, fuse_normalize=False):
        """If fuse_normalize, `img` is the raw [0,1] image and normalization is
        folded into the same kernel (saves one full HBM round trip)."""
        a = self.scheduler["alpha_cumprod_sqrt"][t]                   # (B,)
        om = self.scheduler["one_minus_alphas_cumprod_sqrt"][t]       # (B,)
        x_t = fused_forward_diffusion(
            img, noise, a, om,
            normalize_input=(fuse_normalize and self.auto_normalize))
        return x_t, noise, t

    def loss(self, y, noise, t):
        return diffusion_loss(y, noise)

    # TODO(synk): `forward`, `sample`, and the denoising network (ABCDenoise)
    # are abstract in the reference module; only the concrete diffusion math is here.


if __name__ == "__main__":
    B, C, H, W = 2, 4, 16, 16
    key = jax.random.PRNGKey(0)
    k_img, k_noise, k_t, k_y = jax.random.split(key, 4)

    img01 = jax.random.uniform(k_img, (B, C, H, W), dtype=jnp.float32)   # [0,1] image

    sched = make_linear_scheduler(timesteps=1000)
    diff = ABCDiffusionPallas(sched, image_size=H, auto_normalize=True)

    # standalone normalize kernel (API parity check)
    img_norm = diff.normalize(img01)

    # fused normalize + forward diffusion (single HBM pass over img/noise)
    noise = diff.generate_noise(k_noise, img01.shape)
    t = diff.sample_timesteps(k_t, B)
    x_t, noise_used, t_used = diff.forward_diffusion(img01, noise, t, fuse_normalize=True)

    # fake model prediction for the loss path
    y_pred = noise + 0.01 * jax.random.normal(k_y, noise.shape, dtype=jnp.float32)
    loss_val = diff.loss(y_pred, noise_used, t_used)

    jax.block_until_ready((img_norm, x_t, loss_val))

    # pure-JAX references
    img_ref = img01 * 2.0 - 1.0
    a = sched["alpha_cumprod_sqrt"][t][:, None, None, None]
    om = sched["one_minus_alphas_cumprod_sqrt"][t][:, None, None, None]
    xt_ref = a * img_ref + om * noise
    loss_ref = jnp.mean(jnp.mean(((y_pred - noise) ** 2).reshape(B, -1), axis=-1))

    assert jnp.allclose(img_norm, img_ref, rtol=1e-5, atol=1e-5)
    assert jnp.allclose(x_t, xt_ref, rtol=1e-5, atol=1e-5)
    assert jnp.allclose(loss_val, loss_ref, rtol=1e-5, atol=1e-6)

    print("KERNEL_OK")
</pallas_src>

<mosaic_0001>
module attributes {stable_mosaic.version = 11 : i64} {
  func.func @_normalize_kernel(%arg0: i32, %arg1: i32, %arg2: memref<1x8x128xf32, #tpu.memory_space<vmem>>, %arg3: memref<1x8x128xf32, #tpu.memory_space<vmem>>) attributes {dimension_semantics = [#tpu.dimension_semantics<parallel>, #tpu.dimension_semantics<parallel>], iteration_bounds = array<i64: 2, 1>, scalar_prefetch = 0 : i64, scratch_operands = 0 : i64, tpu.core_type = #tpu.core_type<tc>, window_params = [{transform_indices = @transform_0, window_bounds = array<i64: 1, 8, 128>}, {transform_indices = @transform_1, window_bounds = array<i64: 1, 8, 128>}]} {
    %c0 = arith.constant 0 : index
    %c0_0 = arith.constant 0 : index
    %c0_1 = arith.constant 0 : index
    %0 = vector.load %arg2[%c0, %c0_0, %c0_1] : memref<1x8x128xf32, #tpu.memory_space<vmem>>, vector<1x8x128xf32>
    %cst = arith.constant 2.000000e+00 : f32
    %1 = vector.broadcast %cst : f32 to vector<1x8x128xf32>
    %2 = arith.mulf %0, %1 : vector<1x8x128xf32>
    %cst_2 = arith.constant 1.000000e+00 : f32
    %3 = vector.broadcast %cst_2 : f32 to vector<1x8x128xf32>
    %4 = arith.subf %2, %3 : vector<1x8x128xf32>
    %c0_3 = arith.constant 0 : index
    %c0_4 = arith.constant 0 : index
    %c0_5 = arith.constant 0 : index
    %5 = vector.load %arg3[%c0_3, %c0_4, %c0_5] : memref<1x8x128xf32, #tpu.memory_space<vmem>>, vector<1x8x128xf32>
    tpu.vector_store %arg3[%c0_3, %c0_4, %c0_5], %4 {strides = array<i32>} : memref<1x8x128xf32, #tpu.memory_space<vmem>>, vector<1x8x128xf32>,
    return
  }
  func.func @transform_0(%arg0: i32, %arg1: i32) -> (i32, i32, i32) {
    %c0_i32 = arith.constant 0 : i32
    %c0_i32_0 = arith.constant 0 : i32
    return %arg0, %arg1, %c0_i32 : i32, i32, i32
  }
  func.func @transform_1(%arg0: i32, %arg1: i32) -> (i32, i32, i32) {
    %c0_i32 = arith.constant 0 : i32
    %c0_i32_0 = arith.constant 0 : i32
    return %arg0, %arg1, %c0_i32 : i32, i32, i32
  }
}

</mosaic_0001>

<bundles_post_ra>
// kernel: tpu_custom_call.1
= control target key start
LH: loop header
LB: loop body
LE: loop exit
PB: predicated region body
PF: predicated region fallthrough
CT: control target
= control target key end

     0   :  { %6 = vsyncpa [#allocation3], 0  ;;  %s580_s0 = inlined_call_operand.hbm [shape: f32[2,8,128], index: 0, kind: input, shape index: {}]   ;;  %s581_s1 = inlined_call_operand.hbm [shape: f32[2,8,128], index: 1, kind: output, shape index: {}]  }
   0x1   :  { %8 = vsyncpa [#allocation3 + $0x1], 0 }
   0x2   :  { %9 = vsyncpa [#allocation4], 0 }
   0x3   :  { %11 = vsyncpa [#allocation4 + $0x1], 0  ;;  %s446_s6 = smov 0   ;;  %s448_s7 = smov 0  }
   0x4   :  { %s450_s8 = smov 0   ;;  %s452_s9 = smov 0  }
   0x5   :  { %s454_s10 = smov 0   ;;  %s456_s11 = smov 0  }
   0x6 LB: > { %s248_s12 = sadd.s32 4294967295, %s432_s11   ;;  %s249_s13 = sadd.s32 4294967294, %s432_s11   ;;  %s432_s11 = sphi %s456_s11, %s17_s11   ;;  %s428_s10 = sphi %s454_s10, %s593_s10   ;;  %s424_s9 = sphi %s452_s9, %s592_s9   ;;  %s420_s8 = sphi %s450_s8, %s591_s8   ;;  %s416_s7 = sphi %s448_s7, %s590_s7   ;;  %s412_s6 = sphi %s446_s6, %s589_s6  }
   0x7   : > { %s29_s14 = sadd.s32 1, %s428_s10  ;;  %s38_s15 = sadd.s32 1, %s420_s8 }
   0x8   : > { %p31_p0 = scmp.ge.s32.totalorder %s29_s14, 2  ;;  %p45_p1 = scmp.ne.s32.totalorder %s420_s8, %s416_s7 }
   0x9   : > { %p46_p2 = scmp.eq.s32.totalorder %s432_s11, 0  ;;  %p51_p3 = scmp.ne.s32.totalorder %s416_s7, %s412_s6 }
   0xa   : > { %s595_s14 = smov (%p31_p0, %s29_s14), 0  ;;  %p52_p5 = scmp.eq.s32.totalorder %s248_s12, 0 }
   0xb   : > { %p487_p4 = por %p46_p2, %p45_p1  ;;  %s33_s17 = ssub.s32 %s428_s10, %s595_s14 }
   0xc   : > { %p77_p6 = scmp.eq.s32.totalorder %s248_s12, 1  ;;  %p36_p7 = scmp.eq.s32.totalorder %s33_s17, 0 }
   0xd   : > { %p493_p8 = por %p52_p5, %p51_p3  ;;  %p83_p10 = scmp.eq.s32.totalorder %s249_s13, 1 }
   0xe   : > { %p497_p9 = por %p77_p6, %p45_p1  ;;  %p274_p13 = scmp.lt.s32.totalorder %s432_s11, 2 }
   0xf   : > { %s502_s20 = scalar_select %p36_p7, %s420_s8, %s38_s15  }
  0x10   : > { %p504_p11 = por %p83_p10, %p51_p3  ;;  %s103_s22 = sand.u32 1, %s420_s8  }
  0x11   : > { %s252_s23 = sshll.u32 %s103_s22, 3  ;;  %s253_s24 = sshll.u32 %s428_s10, 7 }
  0x12   : > { %s585_s21 = scalar_select %p504_p11, 1, 0 }
  0x13   : > { %s113_s27 = scalar_lea.hbm %s580_s0, %s253_s24  ;;  %s107_s28 = scalar_lea.vmem [#allocation2], %s252_s23 }
  0x14   : > { %s115_s29 = sshll.u32 %s107_s28, 4  ;;  %p517_p0 = pnand %p274_p13, %p487_p4  ;;  %s116_s29 = int_to_ptr.vmem [resolvable:$true] %s115_s29 }
  0x15   : > { %p254_p1 = scmp.ge.s32.totalorder %s432_s11, 1  ;;  %p120_p2 = scmp.lt.s32.totalorder %s432_s11, 3 }
  0x16   : > { %s104_s2 = scalar_lea.sflag [#allocation3], %s103_s22  ;;  %p326_p3 = pneg %p517_p0 }
  0x17   : > { %s337_s3 = scalar_lea.vmem %s116_s29, 128  ;;  %s434_s4 = smov [#allocation2]  }
  0x18   : > { %p338_p5 = scmp.ne.s32.totalorder %s116_s29, %s337_s3  ;;  %s342_s5 = sshll.u32 %s434_s4, 4  ;;  %s343_s5 = int_to_ptr.vmem [resolvable:$false] %s342_s5 }
  0x19   : > { %s344_s12 = scalar_lea.vmem %s343_s5, 256  ;;  %p345_p10 = scmp.lt.s32.totalorder %s116_s29, %s343_s5 }
  0x1a   : > { %p340_p6 = pnand %p338_p5, %p326_p3  ;;  %p346_p12 = scmp.lt.s32.totalorder %s344_s12, %s337_s3 }
  0x1c   : > { %p341_p7 = pneg %p340_p6  ;;  %p347_p4 = por %p346_p12, %p345_p10 }
  0x1e   : > { %p348_p13 = pnand %p347_p4, %p341_p7 }
  0x20   : > { %351 = shalt.err (!%p348_p13)
}
  0x21   : > { %269 = dma.hbm_to_vmem [thread:$0]  (!%p517_p0), %s113_s27, 128, %s116_s29, %s104_s2  }
  0x22   : > { %p121_p11 = pnand %p254_p1, %p120_p2 }
  0x23   : > { %s532_s13 = sand.u32 (!%p121_p11), 1, %s416_s7  }
  0x24   : > { %124 = sbr.rel (%p121_p11) target bundleno = 66 (0x42), region = 24  ;;  %s255_s15 = sshll.u32 (!%p121_p11), %s532_s13, 3 }
  0x25   : > { %s127_s16 = scalar_lea.sflag (!%p121_p11), [#allocation3], %s532_s13  ;;  %s130_s17 = scalar_lea.vmem (!%p121_p11), [#allocation2], %s255_s15 }
  0x29   : > { %403 = dma.done.wait (%p493_p8), %s127_s16, 128  }
  0x2a   : > { %405 = vsyncadd (%p493_p8), %s127_s16, 4294967168  ;;  %v149_v0 = vld [vmem:[%s130_s17] sm:$0xff]  ;;  %s148_s22 = scalar_lea.vmem [#allocation5], %s255_s15  ;;  %s259_s24 = sshll.u32 %s424_s9, 7 }
  0x2b   : > { %s168_s23 = sshll.u32 %s148_s22, 4  ;;  %v150_v1 = vmul.f32 2.0, %v149_v0  ;;  %s166_s27 = scalar_lea.hbm %s581_s1, %s259_s24  ;;  %s169_s23 = int_to_ptr.vmem [resolvable:$true] %s168_s23 }
  0x2c   : > { %s154_s28 = scalar_lea.sflag [#allocation4], %s532_s13  ;;  %s352_s29 = scalar_lea.vmem %s169_s23, 128 }
  0x2d   : > { %v257_v2 = vadd.f32 -1.0, %v150_v1  ;;  %p353_p11 = scmp.ne.s32.totalorder %s169_s23, %s352_s29  ;;  %s435_s18 = smov [#allocation5]  }
  0x2e   : > { %s356_s30 = sshll.u32 %s435_s18, 4  ;;  %s357_s30 = int_to_ptr.vmem [resolvable:$false] %s356_s30 }
  0x2f   : > { %152 = vst [vmem:[%s148_s22] sm:$0xff] %v257_v2  ;;  %p354_p8 = pnand %p353_p11, %p497_p9  ;;  %s358_s2 = scalar_lea.vmem %s357_s30, 256 }
  0x30   : > { %p359_p0 = scmp.lt.s32.totalorder %s169_s23, %s357_s30  ;;  %p360_p1 = scmp.lt.s32.totalorder %s358_s2, %s352_s29 }
  0x31   : > { %p355_p12 = pneg %p354_p8 }
  0x32   : > { %p361_p2 = por %p360_p1, %p359_p0 }
  0x34   : > { %p362_p3 = pnand %p361_p2, %p355_p12 }
  0x36   : > { %365 = shalt.err (!%p362_p3)
}
  0x37   : > { %s366_s9 = scalar_lea.hbm %s166_s27, 128  ;;  %s370_s5 = scalar_lea.hbm %s581_s1, 256 }
  0x38   : > { %p367_p5 = scmp.ne.s32.totalorder %s166_s27, %s366_s9  ;;  %p371_p10 = scmp.lt.s32.totalorder %s166_s27, %s581_s1 }
  0x39   : > { %p372_p4 = scmp.lt.s32.totalorder %s370_s5, %s366_s9 }
  0x3a   : > { %p368_p6 = pnand %p367_p5, %p497_p9 }
  0x3b   : > { %p373_p13 = por %p372_p4, %p371_p10 }
  0x3c   : > { %p369_p7 = pneg %p368_p6 }
  0x3e   : > { %p374_p11 = pnand %p373_p13, %p369_p7 }
  0x40   : > { %377 = shalt.err (!%p374_p11)
}
  0x41   : > { %264 = dma.vmem_to_hbm [thread:$0]  (%p497_p9), %s169_s23, 128, %s166_s27, %s154_s28  }
  0x42 PF: > { %s180_s15 = sand.u32 1, %s412_s6   ;;  %p587_p8 = scmp.ne.s32.totalorder %s585_s21, 0 }
  0x43   : > { %p588_p12 = scmp.ge.s32.totalorder %s432_s11, 2  ;;  %s181_s16 = scalar_lea.sflag [#allocation4], %s180_s15 }
  0x45   : > { %p271_p0 = pnand %p588_p12, %p587_p8 }
  0x47   : > { %p272_p1 = pneg %p271_p0 }
  0x49   : > { %407 = dma.done.wait (%p272_p1), %s181_s16, 128  }
  0x4a   : > { %409 = vsyncadd (%p272_p1), %s181_s16, 4294967168  ;;  %s17_s11 = sadd.s32 1, %s432_s11   ;;  %s589_s6 = smov %s416_s7 }
  0x4b   : > { %p14_p2 = scmp.ge.s32.totalorder %s17_s11, 4   ;;  %s590_s7 = smov %s420_s8 }
  0x4c   : > { %s591_s8 = smov %s502_s20  ;;  %s592_s9 = smov %s428_s10 }
  0x4d   : > { %s593_s10 = smov %s595_s14  ;;  %16 = sbr.rel (!%p14_p2) target bundleno = 6 (0x6), region = 69 }
  0x52   :  { %186 = vsyncpa [#allocation3], 1 }
  0x53   :  { %188 = vsyncpa [#allocation3 + $0x1], 1 }
  0x54   :  { %189 = vsyncpa [#allocation4], 1 }
  0x55   :  { %191 = vsyncpa [#allocation4 + $0x1], 1 }

</bundles_post_ra>
